<compile_context>
chip_gen: v6e
topology: v6e:2x2x1
jax: 0.10.0
libtpu: 0.0.40
codegen_flags: <defaults>
</compile_context>

<pallas_src>
import jax
import jax.numpy as jnp
from jax.experimental import pallas as pl
from jax.experimental.pallas import tpu as pltpu

HIDDEN = 128
OUT_DIM = 3
OUT_PAD = 128  # lane-dense width used only for the resident W2 tile fed to the MXU


def _mlp_kernel(x_ref, w1_ref, b1_ref, w2_ref, b2_ref, o_ref):
    # x_ref : (tile, F)   f32   (streamed per grid step)
    # w1_ref: (F, 128)    bf16  (resident)
    # b1_ref: (1, 128)    f32   (resident)
    # w2_ref: (128, 128)  bf16  (resident; columns 3..127 are zero padding)
    # b2_ref: (1, 3)      f32   (resident)
    # o_ref : (tile, 3)   f32
    x = x_ref[...].astype(jnp.bfloat16)  # VPU cast, hidden under the x DMA
    h = jnp.dot(x, w1_ref[...], preferred_element_type=jnp.float32)      # (tile, 128) f32 acc
    h = jnp.maximum(h + b1_ref[...], 0.0)                                 # bias + ReLU in f32
    o = jnp.dot(h.astype(jnp.bfloat16), w2_ref[...],
                preferred_element_type=jnp.float32)                       # (tile, 128) f32 acc
    # Narrow epilogue: only the 3 real logits get the bias add and the store.
    o_ref[...] = (o[:, :OUT_DIM] + b2_ref[...]).astype(o_ref.dtype)


def _round_up(a, m):
    return (a + m - 1) // m * m


def _choose_tile(n, f, max_tile):
    """Pick the batch tile: VMEM-aware, multiple of 16, >=2 grid steps when the batch allows."""
    max_tile = max(16, (max_tile // 16) * 16)
    # Per-step VMEM estimate (bytes):
    #   x stream   : 2 buffers * tile * F * 4      (f32 input, cast to bf16 in-kernel)
    #   out stream : 2 buffers * tile * 128 * 4    (3-wide block is lane-padded in VMEM)
    #   W1 / W2    : double-buffered bf16 residents (+ tiny biases / slack)
    budget = 40 * 1024 * 1024
    fixed = 4 * f * HIDDEN + 4 * HIDDEN * OUT_PAD + (1 << 16)
    per_row = 8 * f + 8 * 128
    cap = max(16, ((budget - fixed) // per_row) // 16 * 16)
    tile = min(max_tile, cap)
    tile = min(tile, _round_up(n, 16))          # never larger than the (16-rounded) batch
    if n >= 32:                                 # v7x megacore: give the grid at least 2 steps
        tile = min(tile, _round_up(pl.cdiv(n, 2), 16))
    return max(16, tile)


def joint_classifier_forward(x, w1, b1, w2, b2, *, tile_n=1024):
    """x: (N, input_dim) f32 -> (N, 3) f32.  Matches Linear(F,128) -> ReLU -> Linear(128,3)."""
    n, f = x.shape
    hidden = w1.shape[1]
    out_dim = w2.shape[1]

    # Resident operands (tiny; prepared once). W2 is zero-padded to a lane-dense 128 columns so
    # the second matmul is a clean MXU tile; padded columns never reach the output.
    w1_bf = w1.astype(jnp.bfloat16)
    w2_bf = jnp.zeros((hidden, OUT_PAD), jnp.bfloat16).at[:, :out_dim].set(
        w2.astype(jnp.bfloat16))
    b1_2d = b1.reshape(1, hidden).astype(jnp.float32)
    b2_2d = b2.reshape(1, out_dim).astype(jnp.float32)

    tile = _choose_tile(n, f, tile_n)
    grid = (pl.cdiv(n, tile),)  # ragged last block: padded reads, OOB rows dropped on store

    out = pl.pallas_call(
        _mlp_kernel,
        out_shape=jax.ShapeDtypeStruct((n, out_dim), jnp.float32),
        grid_spec=pl.GridSpec(
            grid=grid,
            in_specs=[
                pl.BlockSpec((tile, f), lambda i: (i, 0)),           # x: streams per step (f32)
                pl.BlockSpec((f, hidden), lambda i: (0, 0)),         # W1: resident
                pl.BlockSpec((1, hidden), lambda i: (0, 0)),         # b1: resident
                pl.BlockSpec((hidden, OUT_PAD), lambda i: (0, 0)),   # W2 (lane-padded): resident
                pl.BlockSpec((1, out_dim), lambda i: (0, 0)),        # b2: resident
            ],
            out_specs=pl.BlockSpec((tile, out_dim), lambda i: (i, 0)),
        ),
        compiler_params=pltpu.CompilerParams(
            dimension_semantics=("parallel",),   # independent batch steps (2 TCs on v7x)
            vmem_limit_bytes=48 * 1024 * 1024,   # > v5e/v6e defaults, headroom under v7x 64 MiB
        ),
    )(x.astype(jnp.float32), w1_bf, b1_2d, w2_bf, b2_2d)

    return out


def init_params(key, input_dim, hidden=HIDDEN, out_dim=OUT_DIM):
    """Deterministic init mimicking nn.Linear's uniform(-1/sqrt(fan_in), 1/sqrt(fan_in))."""
    k1, k2, k3, k4 = jax.random.split(key, 4)
    bound1 = 1.0 / jnp.sqrt(input_dim)
    bound2 = 1.0 / jnp.sqrt(hidden)
    w1 = jax.random.uniform(k1, (input_dim, hidden), jnp.float32, -bound1, bound1)
    b1 = jax.random.uniform(k2, (hidden,), jnp.float32, -bound1, bound1)
    w2 = jax.random.uniform(k3, (hidden, out_dim), jnp.float32, -bound2, bound2)
    b2 = jax.random.uniform(k4, (out_dim,), jnp.float32, -bound2, bound2)
    return w1, b1, w2, b2


def reference_forward(x, w1, b1, w2, b2):
    h = jnp.maximum(x @ w1 + b1, 0.0)
    return h @ w2 + b2


if __name__ == "__main__":
    key = jax.random.PRNGKey(0)
    k_x, k_x2, k_x3, k_p = jax.random.split(key, 4)

    input_dim = 32
    w1, b1, w2, b2 = init_params(k_p, input_dim)

    # 1) Even multi-step grid (batch 32 -> 2 grid steps of 16 rows).
    x = jax.random.normal(k_x, (32, input_dim), jnp.float32)
    out = jax.block_until_ready(joint_classifier_forward(x, w1, b1, w2, b2))
    ref = reference_forward(x, w1, b1, w2, b2)
    assert out.shape == (32, OUT_DIM)
    # bf16 MXU inputs with f32 accumulation -> loosened tolerance vs f32 reference.
    assert jnp.allclose(out, ref, atol=5e-2, rtol=5e-2), "mismatch vs reference (even grid)"

    # 2) Ragged multi-step grid (batch 40, tile 16 -> 3 steps, last block half out-of-bounds).
    x2 = jax.random.normal(k_x2, (40, input_dim), jnp.float32)
    out2 = jax.block_until_ready(joint_classifier_forward(x2, w1, b1, w2, b2, tile_n=16))
    ref2 = reference_forward(x2, w1, b1, w2, b2)
    assert out2.shape == (40, OUT_DIM)
    assert jnp.allclose(out2, ref2, atol=5e-2, rtol=5e-2), "mismatch vs reference (ragged grid)"

    # 3) Tiny batch (8 rows inside a single 16-row block).
    x3 = jax.random.normal(k_x3, (8, input_dim), jnp.float32)
    out3 = jax.block_until_ready(joint_classifier_forward(x3, w1, b1, w2, b2))
    ref3 = reference_forward(x3, w1, b1, w2, b2)
    assert out3.shape == (8, OUT_DIM)
    assert jnp.allclose(out3, ref3, atol=5e-2, rtol=5e-2), "mismatch vs reference (tiny batch)"

    print("KERNEL_OK")
</pallas_src>

<mosaic_0001>
module attributes {stable_mosaic.version = 11 : i64} {
  func.func @_mlp_kernel(%arg0: i32, %arg1: memref<16x32xf32, #tpu.memory_space<vmem>>, %arg2: memref<32x128xbf16, #tpu.memory_space<vmem>>, %arg3: memref<1x128xf32, #tpu.memory_space<vmem>>, %arg4: memref<128x128xbf16, #tpu.memory_space<vmem>>, %arg5: memref<1x3xf32, #tpu.memory_space<vmem>>, %arg6: memref<16x3xf32, #tpu.memory_space<vmem>>) attributes {dimension_semantics = [#tpu.dimension_semantics<parallel>], iteration_bounds = array<i64: 2>, scalar_prefetch = 0 : i64, scratch_operands = 0 : i64, tpu.core_type = #tpu.core_type<tc>, window_params = [{transform_indices = @transform_0, window_bounds = array<i64: 16, 32>}, {pipeline_mode = #tpu.pipeline_mode<synchronous>, transform_indices = @transform_1, window_bounds = array<i64: 32, 128>}, {pipeline_mode = #tpu.pipeline_mode<synchronous>, transform_indices = @transform_2, window_bounds = array<i64: 1, 128>}, {pipeline_mode = #tpu.pipeline_mode<synchronous>, transform_indices = @transform_3, window_bounds = array<i64: 128, 128>}, {pipeline_mode = #tpu.pipeline_mode<synchronous>, transform_indices = @transform_4, window_bounds = array<i64: 1, 3>}, {transform_indices = @transform_5, window_bounds = array<i64: 16, 3>}]} {
    %c0 = arith.constant 0 : index
    %c0_0 = arith.constant 0 : index
    %0 = vector.load %arg1[%c0, %c0_0] : memref<16x32xf32, #tpu.memory_space<vmem>>, vector<16x32xf32>
    %1 = arith.truncf %0 : vector<16x32xf32> to vector<16x32xbf16>
    %c0_1 = arith.constant 0 : index
    %c0_2 = arith.constant 0 : index
    %2 = vector.load %arg2[%c0_1, %c0_2] : memref<32x128xbf16, #tpu.memory_space<vmem>>, vector<32x128xbf16>
    %cst = arith.constant dense<0.000000e+00> : vector<16x128xf32>
    %3 = tpu.matmul %1, %2, %cst {dimension_numbers = #tpu.dot_dimension_numbers<[1], [0], [0], [1], [0, 0, 1, 1], [], []>} : vector<16x32xbf16>, vector<32x128xbf16>, vector<16x128xf32> -> vector<16x128xf32>
    %c0_3 = arith.constant 0 : index
    %c0_4 = arith.constant 0 : index
    %4 = vector.load %arg3[%c0_3, %c0_4] : memref<1x128xf32, #tpu.memory_space<vmem>>, vector<1x128xf32>
    %5 = vector.broadcast %4 : vector<1x128xf32> to vector<16x128xf32>
    %6 = arith.addf %3, %5 : vector<16x128xf32>
    %cst_5 = arith.constant 0.000000e+00 : f32
    %7 = vector.broadcast %cst_5 : f32 to vector<16x128xf32>
    %8 = arith.maximumf %6, %7 : vector<16x128xf32>
    %9 = arith.truncf %8 : vector<16x128xf32> to vector<16x128xbf16>
    %c0_6 = arith.constant 0 : index
    %c0_7 = arith.constant 0 : index
    %10 = vector.load %arg4[%c0_6, %c0_7] : memref<128x128xbf16, #tpu.memory_space<vmem>>, vector<128x128xbf16>
    %cst_8 = arith.constant dense<0.000000e+00> : vector<16x128xf32>
    %11 = tpu.matmul %9, %10, %cst_8 {dimension_numbers = #tpu.dot_dimension_numbers<[1], [0], [0], [1], [0, 0, 1, 1], [], []>} : vector<16x128xbf16>, vector<128x128xbf16>, vector<16x128xf32> -> vector<16x128xf32>
    %12 = vector.extract_strided_slice %11 {offsets = [0, 0], sizes = [16, 3], strides = [1, 1]} : vector<16x128xf32> to vector<16x3xf32>
    %c0_9 = arith.constant 0 : index
    %c0_10 = arith.constant 0 : index
    %13 = vector.load %arg5[%c0_9, %c0_10] : memref<1x3xf32, #tpu.memory_space<vmem>>, vector<1x3xf32>
    %14 = vector.broadcast %13 : vector<1x3xf32> to vector<16x3xf32>
    %15 = arith.addf %12, %14 : vector<16x3xf32>
    %c0_11 = arith.constant 0 : index
    %c0_12 = arith.constant 0 : index
    %16 = vector.load %arg6[%c0_11, %c0_12] : memref<16x3xf32, #tpu.memory_space<vmem>>, vector<16x3xf32>
    tpu.vector_store %arg6[%c0_11, %c0_12], %15 {strides = array<i32>} : memref<16x3xf32, #tpu.memory_space<vmem>>, vector<16x3xf32>,
    return
  }
  func.func @transform_0(%arg0: i32) -> (i32, i32) {
    %c0_i32 = arith.constant 0 : i32
    %c0_i32_0 = arith.constant 0 : i32
    return %arg0, %c0_i32 : i32, i32
  }
  func.func @transform_1(%arg0: i32) -> (i32, i32) {
    %c0_i32 = arith.constant 0 : i32
    %c0_i32_0 = arith.constant 0 : i32
    %c0_i32_1 = arith.constant 0 : i32
    return %c0_i32, %c0_i32_0 : i32, i32
  }
  func.func @transform_2(%arg0: i32) -> (i32, i32) {
    %c0_i32 = arith.constant 0 : i32
    %c0_i32_0 = arith.constant 0 : i32
    %c0_i32_1 = arith.constant 0 : i32
    return %c0_i32, %c0_i32_0 : i32, i32
  }
  func.func @transform_3(%arg0: i32) -> (i32, i32) {
    %c0_i32 = arith.constant 0 : i32
    %c0_i32_0 = arith.constant 0 : i32
    %c0_i32_1 = arith.constant 0 : i32
    return %c0_i32, %c0_i32_0 : i32, i32
  }
  func.func @transform_4(%arg0: i32) -> (i32, i32) {
    %c0_i32 = arith.constant 0 : i32
    %c0_i32_0 = arith.constant 0 : i32
    %c0_i32_1 = arith.constant 0 : i32
    return %c0_i32, %c0_i32_0 : i32, i32
  }
  func.func @transform_5(%arg0: i32) -> (i32, i32) {
    %c0_i32 = arith.constant 0 : i32
    %c0_i32_0 = arith.constant 0 : i32
    return %arg0, %c0_i32 : i32, i32
  }
}

</mosaic_0001>

<bundles_post_ra>
// kernel: tpu_custom_call.1
= control target key start
LH: loop header
LB: loop body
LE: loop exit
PB: predicated region body
PF: predicated region fallthrough
CT: control target
= control target key end

     0   :  { %10 = vsyncpa [#allocation3], 0  ;;  %s1006_s0 = inlined_call_operand.hbm [shape: f32[32,32], index: 0, kind: input, shape index: {}]   ;;  %s1007_s1 = inlined_call_operand.hbm [shape: bf16[32,128], index: 1, kind: input, shape index: {}]   ;;  %s1008_s2 = inlined_call_operand.vmem [shape: f32[1,128], index: 2, kind: input, shape index: {}]   ;;  %s1009_s3 = inlined_call_operand.hbm [shape: bf16[128,128], index: 3, kind: input, shape index: {}]   ;;  %s1010_s4 = inlined_call_operand.vmem [shape: f32[1,3], index: 4, kind: input, shape index: {}]   ;;  %s1011_s5 = inlined_call_operand.vmem [shape: f32[32,3], index: 5, kind: output, shape index: {}]  }
   0x1   :  { %12 = vsyncpa [#allocation3 + $0x1], 0 }
   0x2   :  { %13 = vsyncpa [#allocation5], 0  ;;  %s860_s18 = smov 0   ;;  %s862_s19 = smov 0  }
   0x3   :  { %s864_s20 = smov 0   ;;  %s866_s21 = smov 0  }
   0x4 LB: > { %s554_s22 = sadd.s32 4294967295, %s819_s21   ;;  %p39_p0 = scmp.ne.s32.totalorder %s811_s19, %s807_s18  ;;  %s819_s21 = sphi %s866_s21, %s1028_s21   ;;  %s815_s20 = sphi %s864_s20, %s1027_s20   ;;  %s811_s19 = sphi %s862_s19, %s1026_s19   ;;  %s807_s18 = sphi %s860_s18, %s1025_s18  }
   0x5   : > { %p882_p1 = scmp.eq.s32.totalorder %s554_s22, 0  ;;  %p556_p2 = scmp.ge.s32.totalorder %s819_s21, 1 }
   0x6   : > { %p160_p3 = scmp.lt.s32.totalorder %s819_s21, 3  ;;  %s821_s26 = smov [#allocation4]  }
   0x7   : > { %s1016_s23 = scalar_select %p882_p1, 1, 0 }
   0x8   : > { %p890_p4 = por %p882_p1, %p39_p0  ;;  %p894_p5 = pnand %p556_p2, %p160_p3 }
   0x9   : > { %s172_s27 = sshll.u32 %s821_s26, 4  ;;  %s822_s29 = smov [#allocation6]   ;;  %s173_s27 = int_to_ptr.vmem [resolvable:$true] %s172_s27 }
   0xa   : > { %s1017_s24 = scalar_select %p890_p4, 1, 0 }
   0xb   : > { %s1018_s25 = scalar_select %p894_p5, 1, 0 }
   0xc   : > { %p635_p6 = pneg %p894_p5  ;;  %s188_s30 = sshll.u32 %s822_s29, 4  ;;  %s189_s30 = int_to_ptr.vmem [resolvable:$true] %s188_s30 }
   0xd   : > { %s712_s6 = scalar_lea.vmem %s173_s27, 256  ;;  %p720_p12 = scmp.lt.s32.totalorder %s173_s27, %s173_s27 }
   0xe   : > { %p902_p7 = pnand %p635_p6, %p882_p1  ;;  %p713_p9 = scmp.ne.s32.totalorder %s173_s27, %s712_s6 }
   0xf   : > { %p721_p13 = scmp.lt.s32.totalorder %s712_s6, %s712_s6 }
  0x10   : > { %p703_p8 = pneg %p902_p7 }
  0x11   : > { %p722_p0 = por %p721_p13, %p720_p12 }
  0x12   : > { %p715_p10 = pnand %p713_p9, %p703_p8 }
  0x14   : > { %p716_p11 = pneg %p715_p10 }
  0x16   : > { %p723_p2 = pnand %p722_p0, %p716_p11 }
  0x18   : > { %726 = shalt.err (!%p723_p2)
}
  0x19   : > { %s823_s7 = smov 64   ;;  %s824_s8 = smov 4  }
  0x1a   : > { %638 = dma.hbm_to_vmem [thread:$0]  (!%p902_p7), %s1007_s1, 256, %s173_s27, [#allocation5], %s823_s7, %s823_s7, %s824_s8  }
  0x1b   : > { %s738_s11 = scalar_lea.vmem %s189_s30, 1024  ;;  %p746_p10 = scmp.lt.s32.totalorder %s189_s30, %s189_s30 }
  0x1c   : > { %p739_p3 = scmp.ne.s32.totalorder %s189_s30, %s738_s11  ;;  %p747_p1 = scmp.lt.s32.totalorder %s738_s11, %s738_s11 }
  0x1e   : > { %p741_p6 = pnand %p739_p3, %p703_p8  ;;  %p748_p12 = por %p747_p1, %p746_p10 }
  0x20   : > { %p742_p9 = pneg %p741_p6 }
  0x22   : > { %p749_p11 = pnand %p748_p12, %p742_p9 }
  0x24   : > { %752 = shalt.err (!%p749_p11)
}
  0x25   : > { %641 = dma.hbm_to_vmem [thread:$0]  (!%p902_p7), %s1009_s3, 1024, %s189_s30, [#allocation5], %s823_s7, %s823_s7, %s824_s8  }
  0x26   : > { %s925_s14 = sadd.s32 1, %s819_s21   ;;  %s26_s15 = sadd.s32 1, %s815_s20 }
  0x27   : > { %s23_s16 = ssub.s32 %s819_s21, %s925_s14  ;;  %p33_p1 = scmp.ne.s32.totalorder %s815_s20, %s811_s19 }
  0x28   : > { %p24_p8 = scmp.eq.s32.totalorder %s23_s16, 0  ;;  %p34_p13 = scmp.eq.s32.totalorder %s819_s21, 0 }
  0x29   : > { %p648_p0 = scmp.lt.s32.totalorder %s819_s21, 2  ;;  %s205_s17 = sand.u32 1, %s815_s20  }
  0x2a   : > { %s936_s18 = scalar_select %p24_p8, %s815_s20, %s26_s15  }
  0x2b   : > { %p35_p2 = por %p34_p13, %p33_p1  ;;  %s560_s26 = sshll.u32 %s205_s17, 4 }
  0x2c   : > { %s584_s27 = sshll.u32 %s819_s21, 8  ;;  %s209_s30 = scalar_lea.vmem [#allocation2], %s560_s26 }
  0x2d   : > { %s942_s6 = scalar_lea.hbm %s1006_s0, %s584_s27  ;;  %s216_s7 = sshll.u32 %s209_s30, 4  ;;  %s948_s7 = int_to_ptr.vmem [resolvable:$true] %s216_s7 }
  0x2e   : > { %p944_p7 = pnand %p648_p0, %p35_p2  ;;  %s950_s9 = scalar_lea.sflag [#allocation3], %s205_s17 }
  0x2f   : > { %s753_s10 = scalar_lea.hbm %s942_s6, 256  ;;  %s758_s13 = scalar_lea.hbm %s1006_s0, 512 }
  0x30   : > { %p754_p3 = scmp.ne.s32.totalorder %s942_s6, %s753_s10  ;;  %p755_p6 = pneg %p944_p7 }
  0x31   : > { %p759_p12 = scmp.lt.s32.totalorder %s942_s6, %s1006_s0  ;;  %p760_p11 = scmp.lt.s32.totalorder %s758_s13, %s753_s10 }
  0x32   : > { %p756_p9 = pnand %p755_p6, %p754_p3 }
  0x33   : > { %p761_p1 = por %p760_p11, %p759_p12 }
  0x34   : > { %p757_p10 = pneg %p756_p9 }
  0x36   : > { %p762_p8 = pnand %p761_p1, %p757_p10 }
  0x38   : > { %765 = shalt.err (!%p762_p8)
}
  0x39   : > { %s766_s17 = scalar_lea.vmem %s948_s7, 256  ;;  %s825_s26 = smov [#allocation2]  }
  0x3a   : > { %p767_p13 = scmp.ne.s32.totalorder %s948_s7, %s766_s17  ;;  %s771_s27 = sshll.u32 %s825_s26, 4  ;;  %s772_s27 = int_to_ptr.vmem [resolvable:$false] %s771_s27 }
  0x3b   : > { %s773_s28 = scalar_lea.vmem %s772_s27, 512  ;;  %p774_p3 = scmp.lt.s32.totalorder %s948_s7, %s772_s27 }
  0x3c   : > { %p769_p0 = pnand %p767_p13, %p755_p6  ;;  %p775_p9 = scmp.lt.s32.totalorder %s773_s28, %s766_s17 }
  0x3e   : > { %p770_p2 = pneg %p769_p0  ;;  %p776_p4 = por %p775_p9, %p774_p3 }
  0x40   : > { %p777_p5 = pnand %p776_p4, %p770_p2 }
  0x42   : > { %780 = shalt.err (!%p777_p5)
}
  0x43   : > { %s826_s29 = smov 128   ;;  %s827_s30 = smov 8  }
  0x44   : > { %645 = dma.hbm_to_vmem [thread:$0]  (!%p944_p7), %s942_s6, 256, %s948_s7, %s950_s9, %s826_s29, %s826_s29, %s827_s30  }
  0x45   : > { %p1021_p6 = scmp.ne.s32.totalorder %s1018_s25, 0 }
  0x46   : > { %s230_s10 = sand.u32 (!%p1021_p6), 1, %s811_s19   ;;  %p1022_p10 = scmp.ne.s32.totalorder (!%p1021_p6), %s1017_s24, 0 }
  0x47   : > { %228 = sbr.rel (%p1021_p6) target bundleno = 493 (0x1ed), region = 40  ;;  %s564_s11 = sshll.u32 (!%p1021_p6), %s230_s10, 4 }
  0x48   : > { %s231_s12 = scalar_lea.sflag (!%p1021_p6), [#allocation3], %s230_s10  ;;  %s234_s13 = scalar_lea.vmem (!%p1021_p6), [#allocation2], %s564_s11 }
  0x4c   : > { %798 = dma.done.wait (%p1022_p10), %s231_s12, 256  }
  0x4d   : > { %800 = vsyncadd (%p1022_p10), %s231_s12, 4294967040  ;;  %p1023_p4 = scmp.ne.s32.totalorder %s1016_s23, 0 }
  0x4f   : > { %802 = dma.done.wait (%p1023_p4), [#allocation5], 1280  }
  0x50   : > { %804 = vsyncadd (%p1023_p4), [#allocation5], 4294966016  ;;  %v828_v0 = vmov 0.0   ;;  %vm829_vm0 = vmmov 0   ;;  %v691_v1 = vld [vmem:[#allocation4 + $0x8] sm:$0xff]   ;;  %v692_v2 = vld [vmem:[#allocation4] sm:$0xff]  }
  0x51   : > { %597 = vmatprep.subr.bf16.mxu0 %v828_v0  ;;  %601 = vmatprep.mubr.msk.bf16.mxu0 %vm829_vm0, %v828_v0  ;;  %v277_v3 = vld [vmem:[%s234_s13] sm:$0xff]  ;;  %v278_v4 = vld [vmem:[%s234_s13 + $0x8] sm:$0xff]  ;;  %vm303_vm1 = vcmask 261120   ;;  %s567_s25 = sshll.u32 %s554_s22, 1  ;;  %vm465_vm2 = vcmask 23552  }
  0x52   : > { %605 = vmatprep.subr.bf16.mxu1 %v828_v0  ;;  %621 = vmatprep.mubr.msk.bf16.mxu1 %vm829_vm0, %v828_v0  ;;  %v693_v5 = vld [vmem:[#allocation6 + $0x38] sm:$0xff]   ;;  %v279_v6 = vpack.c.bf16 %v278_v4, %v277_v3  ;;  %v694_v7 = vld [vmem:[#allocation6 + $0x30] sm:$0xff]   ;;  %v695_v8 = vld [vmem:[#allocation6 + $0x28] sm:$0xff]   ;;  %p271_p5 = scmp.lt.s32.totalorder %s567_s25, 3 }
  0x53   : > { %598 = vmatpush3.bf16.msra.mxu0 %v691_v1  ;;  %606 = vmatpush3.bf16.msra.mxu1 %v693_v5  ;;  %v696_v9 = vld [vmem:[#allocation6 + $0x20] sm:$0xff]   ;;  %v697_v10 = vld [vmem:[#allocation6 + $0x18] sm:$0xff]   ;;  %v698_v11 = vld [vmem:[#allocation6 + $0x10] sm:$0xff]  }
  0x54   : > { %599 = vmatprep.subr.bf16.mxu0 %v828_v0  ;;  %607 = vmatprep.subr.bf16.mxu1 %v828_v0  ;;  %v699_v12 = vld [vmem:[#allocation6 + $0x8] sm:$0xff]   ;;  %v700_v13 = vld [vmem:[#allocation6] sm:$0xff]   ;;  %v569_v14 = vld [vmem:[%s1008_s2] ss:$0 sm:$0xff]  ;;  %s1030_s25 = smov (!%p271_p5, %s567_s25), 3 }
  0x55   : > { %s568_s6 = sshll.u32 %s1030_s25, 3  ;;  %v581_v24 = vld [vmem:[%s1010_s4] ss:$0 sm:$0xff] }
  0x56   : > { %s274_s16 = scalar_lea.vmem %s1011_s5, %s568_s6 }
  0x57   : > { %600 = vmatpush3.bf16.msra.mxu0 %v692_v2  ;;  %608 = vmatpush3.bf16.msra.mxu1 %v694_v7 }
  0x58   : > { %609 = vmatprep.subr.bf16.mxu1 %v828_v0 }
  0x5a   : > { %602 = vmatmul.mubr.msk.bf16.vlgmr.msra.gmra.mxu0 %vm303_vm1, %v279_v6 }
  0x5b   : > { %610 = vmatpush3.bf16.msra.mxu1 %v695_v8 }
  0x5c   : > { %611 = vmatprep.subr.bf16.mxu1 %v828_v0 }
  0x5f   : > { %612 = vmatpush3.bf16.msra.mxu1 %v696_v9 }
  0x60   : > { %613 = vmatprep.subr.bf16.mxu1 %v828_v0 }
  0x63   : > { %614 = vmatpush3.bf16.msra.mxu1 %v697_v10 }
  0x64   : > { %615 = vmatprep.subr.bf16.mxu1 %v828_v0 }
  0x67   : > { %616 = vmatpush3.bf16.msra.mxu1 %v698_v11 }
  0x68   : > { %617 = vmatprep.subr.bf16.mxu1 %v828_v0 }
  0x6b   : > { %618 = vmatpush3.bf16.msra.mxu1 %v699_v12 }
  0x6c   : > { %619 = vmatprep.subr.bf16.mxu1 %v828_v0 }
  0x6f   : > { %620 = vmatpush3.bf16.msra.mxu1 %v700_v13 }
 0x11a   : > { %v341_v15 = vpop.f32.mrf.mxu0 }
 0x11b   : > { %v342_v17 = vadd.f32 %v569_v14, %v341_v15 }
 0x11c   : > { %v603_v16 = vpop.f32.mrf.mxu0 }
 0x11d   : > { %v348_v21 = vmax.f32 %v342_v17, 0.0 }
 0x11e   : > { %v344_v18 = vpop.f32.mrf.mxu0 }
 0x11f   : > { %v345_v19 = vadd.f32 %v569_v14, %v344_v18 }
 0x120   : > { %v604_v20 = vpop.f32.mrf.mxu0 }
 0x121   : > { %v349_v22 = vmax.f32 %v345_v19, 0.0 }
 0x123   : > { %v350_v23 = vpack.c.bf16 %v349_v22, %v348_v21 }
 0x125   : > { %622 = vmatmul.mubr.bf16.vlgmr.msra.gmra.mxu1 %v350_v23 }
 0x1e5   : > { %v449_v25 = vpop.f32.mrf.mxu1 }
 0x1e6   : > { %v463_v26 = vadd.f32 %v581_v24, %v449_v25 }
 0x1e7   : > { %v623_v27 = vpop.f32.mrf.mxu1 }
 0x1e8   : > { %466 = vst.msk [vmem:[%s274_s16] sm:$0xff] %vm465_vm2, %v463_v26 }
 0x1e9   : > { %v452_v28 = vpop.f32.mrf.mxu1 }
 0x1ea   : > { %v464_v29 = vadd.f32 %v581_v24, %v452_v28 }
 0x1eb   : > { %v624_v30 = vpop.f32.mrf.mxu1 }
 0x1ec   : > { %467 = vst.msk [vmem:[%s274_s16 + $0x8] sm:$0xff] %vm465_vm2, %v464_v29 }
 0x1ed PF: > { %s1024_s21 = smov %s936_s18  ;;  %p16_p7 = scmp.ge.s32.totalorder %s925_s14, 4  }
 0x1ee   : > { %s1025_s18 = smov %s811_s19  ;;  %s1026_s19 = smov %s815_s20 }
 0x1ef   : > { %s1027_s20 = smov %s1024_s21  ;;  %s1028_s21 = smov %s925_s14 }
 0x1f0   :  { %18 = sbr.rel (!%p16_p7) target bundleno = 4 (0x4), region = 88 }
 0x1f5   :  { %490 = vsyncpa [#allocation3], 1 }
 0x1f6   :  { %492 = vsyncpa [#allocation3 + $0x1], 1 }
 0x1f7   :  { %493 = vsyncpa [#allocation5], 1 }

</bundles_post_ra>
